<compile_context>
chip_gen: v7x
topology: tpu7x:2x2x1
jax: 0.10.0
libtpu: 0.0.40
codegen_flags: <defaults>
</compile_context>

<pallas_src>
import jax
import jax.numpy as jnp
from jax.experimental import pallas as pl
from jax.experimental.pallas import tpu as pltpu


HIDDEN = 128       # fixed by the module definition (fc1/fc2 width)
LANE = 128         # TPU lane width: pad action dim up to this for the MXU/softmax
NEG_BIAS = -1e30   # bias for padded action columns -> exp() underflows to 0


def _round_up(v, m):
    return (v + m - 1) // m * m


def _choose_batch_tile(B, block_b):
    """Batch tile: multiple of 16 (bf16 sublane packing), >=2 grid steps for
    large batches so v7x's two TensorCores both get work."""
    b16 = _round_up(B, 16)
    block_b = max(16, _round_up(block_b, 16))
    tb = min(block_b, b16)
    if b16 > 512:
        tb = min(tb, _round_up(pl.cdiv(b16, 2), 256))
    return tb


def policy_kernel(x_ref, w1_ref, b1_ref, w2_ref, b2_ref, w3_ref, b3_ref, out_ref):
    x = x_ref[...]

    # fc1 + relu (MXU matmul, f32 accumulation; bias add / relu in f32)
    h1 = jnp.dot(x, w1_ref[...], preferred_element_type=jnp.float32) + b1_ref[...]
    h1 = jnp.maximum(h1, 0.0)

    # fc2 + relu
    h2 = jnp.dot(h1.astype(w2_ref.dtype), w2_ref[...],
                 preferred_element_type=jnp.float32) + b2_ref[...]
    h2 = jnp.maximum(h2, 0.0)

    # fc3: action dim padded to a lane-dense width internally; padded columns
    # carry a -1e30 bias so they contribute exp(..) == 0 to the softmax sum.
    logits = jnp.dot(h2.astype(w3_ref.dtype), w3_ref[...],
                     preferred_element_type=jnp.float32) + b3_ref[...]

    # Numerically-stable softmax over the last axis (== torch dim=1).
    m = jnp.max(logits, axis=-1, keepdims=True)
    e = jnp.exp(logits - m)
    s = jnp.sum(e, axis=-1, keepdims=True)
    probs = e / s                                  # exact normalization

    # Store only the real action columns (narrow HBM writeback).
    a = out_ref.shape[1]
    out_ref[...] = probs[:, :a].astype(out_ref.dtype)


def policy_network_forward(x, params, *, block_b=4096, compute_dtype=jnp.bfloat16):
    """x: [B, state_size] f32 -> action_probs: [B, action_size] f32."""
    w1, b1, w2, b2, w3, b3 = params
    B, S = x.shape
    A = w3.shape[1]

    # --- internal lane padding of the (tiny) action dimension ----------------
    a_pad = _round_up(max(A, LANE), LANE)
    if a_pad != A:
        w3p = jnp.zeros((HIDDEN, a_pad), w3.dtype).at[:, :A].set(w3)
        b3p = jnp.full((1, a_pad), NEG_BIAS, jnp.float32).at[:, :A].set(
            b3.astype(jnp.float32))
    else:
        w3p, b3p = w3, b3

    # --- batch tiling ---------------------------------------------------------
    TB = _choose_batch_tile(B, block_b)
    B_pad = _round_up(B, TB)
    if B_pad != B:
        x = jnp.pad(x, ((0, B_pad - B), (0, 0)))
    grid = (B_pad // TB,)

    # --- bf16 MXU inputs by default; biases + accumulation stay f32 ----------
    xc = x.astype(compute_dtype)
    w1c = w1.astype(compute_dtype)
    w2c = w2.astype(compute_dtype)
    w3c = w3p.astype(compute_dtype)
    b1c = b1.astype(jnp.float32)
    b2c = b2.astype(jnp.float32)
    b3c = b3p.astype(jnp.float32)

    def resident(shape):
        # constant block index -> weights stay VMEM-resident across grid steps
        return pl.BlockSpec(shape, lambda i: (0, 0))

    itemsize = jnp.dtype(compute_dtype).itemsize
    flops = 2 * B_pad * (S * HIDDEN + HIDDEN * HIDDEN + HIDDEN * a_pad)
    bytes_accessed = int(
        B_pad * S * itemsize                                          # x
        + (S * HIDDEN + HIDDEN * HIDDEN + HIDDEN * a_pad) * itemsize  # weights
        + (2 * HIDDEN + a_pad) * 4                                    # biases
        + B_pad * A * 4                                               # narrow output
    )

    out = pl.pallas_call(
        policy_kernel,
        out_shape=jax.ShapeDtypeStruct((B_pad, A), jnp.float32),
        grid=grid,
        in_specs=[
            pl.BlockSpec((TB, S), lambda i: (i, 0)),   # x tile, pipelined
            resident((S, HIDDEN)),                      # W1
            resident((1, HIDDEN)),                      # b1
            resident((HIDDEN, HIDDEN)),                 # W2
            resident((1, HIDDEN)),                      # b2
            resident((HIDDEN, a_pad)),                  # W3 (lane-padded, internal)
            resident((1, a_pad)),                       # b3 (lane-padded, internal)
        ],
        out_specs=pl.BlockSpec((TB, A), lambda i: (i, 0)),  # A == full array dim
        compiler_params=pltpu.CompilerParams(
            dimension_semantics=("parallel",)),          # megacore on v7x
        cost_estimate=pl.CostEstimate(
            flops=flops,
            transcendentals=B_pad * a_pad,               # exp per (padded) logit
            bytes_accessed=bytes_accessed),
    )(xc, w1c, b1c, w2c, b2c, w3c, b3c)

    # strip batch padding only (action dim is already narrow)
    return out[:B] if B_pad != B else out


def init_params(key, state_size, action_size):
    """Deterministic synthetic init; weights stored as [in, out], biases [1, out]."""
    ks = jax.random.split(key, 6)

    def lin(kw, kb, fan_in, fan_out):
        bound = 1.0 / jnp.sqrt(fan_in)
        w = jax.random.uniform(kw, (fan_in, fan_out), jnp.float32, -bound, bound)
        b = jax.random.uniform(kb, (1, fan_out), jnp.float32, -bound, bound)
        return w, b

    w1, b1 = lin(ks[0], ks[1], state_size, HIDDEN)
    w2, b2 = lin(ks[2], ks[3], HIDDEN, HIDDEN)
    w3, b3 = lin(ks[4], ks[5], HIDDEN, action_size)
    return (w1, b1, w2, b2, w3, b3)


def reference_forward(x, params):
    w1, b1, w2, b2, w3, b3 = params
    h1 = jnp.maximum(x @ w1 + b1, 0.0)
    h2 = jnp.maximum(h1 @ w2 + b2, 0.0)
    return jax.nn.softmax(h2 @ w3 + b3, axis=1)


if __name__ == "__main__":
    key = jax.random.PRNGKey(0)
    k_x, k_x2, k_p = jax.random.split(key, 3)

    batch = 8
    state_size = 16
    action_size = 8

    x = jax.random.normal(k_x, (batch, state_size), dtype=jnp.float32)
    params = init_params(k_p, state_size, action_size)
    ref = reference_forward(x, params)

    # Default path: bf16 MXU inputs, f32 accumulation / softmax.
    probs = jax.block_until_ready(policy_network_forward(x, params))
    assert probs.shape == (batch, action_size)
    assert jnp.allclose(probs, ref, atol=2e-2, rtol=2e-2)
    assert jnp.allclose(jnp.sum(probs, axis=1), 1.0, atol=1e-3)

    # Full-f32 path: tight tolerance.
    probs_f32 = jax.block_until_ready(
        policy_network_forward(x, params, compute_dtype=jnp.float32))
    assert jnp.allclose(probs_f32, ref, atol=1e-3, rtol=1e-3)
    assert jnp.allclose(jnp.sum(probs_f32, axis=1), 1.0, atol=1e-3)

    # Multi-tile path (grid > 1) with ragged batch to exercise padding/slicing.
    x2 = jax.random.normal(k_x2, (20, state_size), dtype=jnp.float32)
    probs2 = jax.block_until_ready(policy_network_forward(x2, params, block_b=16))
    ref2 = reference_forward(x2, params)
    assert probs2.shape == (20, action_size)
    assert jnp.allclose(probs2, ref2, atol=2e-2, rtol=2e-2)
    assert jnp.allclose(jnp.sum(probs2, axis=1), 1.0, atol=1e-3)

    print("KERNEL_OK")
</pallas_src>

<mosaic_0001>
module attributes {stable_mosaic.version = 11 : i64} {
  func.func @policy_kernel(%arg0: i32, %arg1: memref<16x16xbf16, #tpu.memory_space<vmem>>, %arg2: memref<16x128xbf16, #tpu.memory_space<vmem>>, %arg3: memref<1x128xf32, #tpu.memory_space<vmem>>, %arg4: memref<128x128xbf16, #tpu.memory_space<vmem>>, %arg5: memref<1x128xf32, #tpu.memory_space<vmem>>, %arg6: memref<128x128xbf16, #tpu.memory_space<vmem>>, %arg7: memref<1x128xf32, #tpu.memory_space<vmem>>, %arg8: memref<16x8xf32, #tpu.memory_space<vmem>>) attributes {dimension_semantics = [#tpu.dimension_semantics<parallel>], iteration_bounds = array<i64: 1>, scalar_prefetch = 0 : i64, scratch_operands = 0 : i64, tpu.core_type = #tpu.core_type<tc>, window_params = [{transform_indices = @transform_0, window_bounds = array<i64: 16, 16>}, {pipeline_mode = #tpu.pipeline_mode<synchronous>, transform_indices = @transform_1, window_bounds = array<i64: 16, 128>}, {pipeline_mode = #tpu.pipeline_mode<synchronous>, transform_indices = @transform_2, window_bounds = array<i64: 1, 128>}, {pipeline_mode = #tpu.pipeline_mode<synchronous>, transform_indices = @transform_3, window_bounds = array<i64: 128, 128>}, {pipeline_mode = #tpu.pipeline_mode<synchronous>, transform_indices = @transform_4, window_bounds = array<i64: 1, 128>}, {pipeline_mode = #tpu.pipeline_mode<synchronous>, transform_indices = @transform_5, window_bounds = array<i64: 128, 128>}, {pipeline_mode = #tpu.pipeline_mode<synchronous>, transform_indices = @transform_6, window_bounds = array<i64: 1, 128>}, {transform_indices = @transform_7, window_bounds = array<i64: 16, 8>}]} {
    %c0 = arith.constant 0 : index
    %c0_0 = arith.constant 0 : index
    %0 = vector.load %arg1[%c0, %c0_0] : memref<16x16xbf16, #tpu.memory_space<vmem>>, vector<16x16xbf16>
    %c0_1 = arith.constant 0 : index
    %c0_2 = arith.constant 0 : index
    %1 = vector.load %arg2[%c0_1, %c0_2] : memref<16x128xbf16, #tpu.memory_space<vmem>>, vector<16x128xbf16>
    %cst = arith.constant dense<0.000000e+00> : vector<16x128xf32>
    %2 = tpu.matmul %0, %1, %cst {dimension_numbers = #tpu.dot_dimension_numbers<[1], [0], [0], [1], [0, 0, 1, 1], [], []>} : vector<16x16xbf16>, vector<16x128xbf16>, vector<16x128xf32> -> vector<16x128xf32>
    %c0_3 = arith.constant 0 : index
    %c0_4 = arith.constant 0 : index
    %3 = vector.load %arg3[%c0_3, %c0_4] : memref<1x128xf32, #tpu.memory_space<vmem>>, vector<1x128xf32>
    %4 = vector.broadcast %3 : vector<1x128xf32> to vector<16x128xf32>
    %5 = arith.addf %2, %4 : vector<16x128xf32>
    %cst_5 = arith.constant 0.000000e+00 : f32
    %6 = vector.broadcast %cst_5 : f32 to vector<16x128xf32>
    %7 = arith.maximumf %5, %6 : vector<16x128xf32>
    %8 = arith.truncf %7 : vector<16x128xf32> to vector<16x128xbf16>
    %c0_6 = arith.constant 0 : index
    %c0_7 = arith.constant 0 : index
    %9 = vector.load %arg4[%c0_6, %c0_7] : memref<128x128xbf16, #tpu.memory_space<vmem>>, vector<128x128xbf16>
    %cst_8 = arith.constant dense<0.000000e+00> : vector<16x128xf32>
    %10 = tpu.matmul %8, %9, %cst_8 {dimension_numbers = #tpu.dot_dimension_numbers<[1], [0], [0], [1], [0, 0, 1, 1], [], []>} : vector<16x128xbf16>, vector<128x128xbf16>, vector<16x128xf32> -> vector<16x128xf32>
    %c0_9 = arith.constant 0 : index
    %c0_10 = arith.constant 0 : index
    %11 = vector.load %arg5[%c0_9, %c0_10] : memref<1x128xf32, #tpu.memory_space<vmem>>, vector<1x128xf32>
    %12 = vector.broadcast %11 : vector<1x128xf32> to vector<16x128xf32>
    %13 = arith.addf %10, %12 : vector<16x128xf32>
    %cst_11 = arith.constant 0.000000e+00 : f32
    %14 = vector.broadcast %cst_11 : f32 to vector<16x128xf32>
    %15 = arith.maximumf %13, %14 : vector<16x128xf32>
    %16 = arith.truncf %15 : vector<16x128xf32> to vector<16x128xbf16>
    %c0_12 = arith.constant 0 : index
    %c0_13 = arith.constant 0 : index
    %17 = vector.load %arg6[%c0_12, %c0_13] : memref<128x128xbf16, #tpu.memory_space<vmem>>, vector<128x128xbf16>
    %cst_14 = arith.constant dense<0.000000e+00> : vector<16x128xf32>
    %18 = tpu.matmul %16, %17, %cst_14 {dimension_numbers = #tpu.dot_dimension_numbers<[1], [0], [0], [1], [0, 0, 1, 1], [], []>} : vector<16x128xbf16>, vector<128x128xbf16>, vector<16x128xf32> -> vector<16x128xf32>
    %c0_15 = arith.constant 0 : index
    %c0_16 = arith.constant 0 : index
    %19 = vector.load %arg7[%c0_15, %c0_16] : memref<1x128xf32, #tpu.memory_space<vmem>>, vector<1x128xf32>
    %20 = vector.broadcast %19 : vector<1x128xf32> to vector<16x128xf32>
    %21 = arith.addf %18, %20 : vector<16x128xf32>
    %cst_17 = arith.constant dense<0xFF800000> : vector<16xf32>
    %22 = vector.multi_reduction <maximumf>, %21, %cst_17 [1] : vector<16x128xf32> to vector<16xf32>
    %23 = vector.shape_cast %22 : vector<16xf32> to vector<16x1xf32>
    %24 = vector.broadcast %23 : vector<16x1xf32> to vector<16x128xf32>
    %25 = arith.subf %21, %24 : vector<16x128xf32>
    %26 = math.exp %25 : vector<16x128xf32>
    %cst_18 = arith.constant dense<0.000000e+00> : vector<16xf32>
    %27 = vector.multi_reduction <add>, %26, %cst_18 [1] : vector<16x128xf32> to vector<16xf32>
    %28 = vector.shape_cast %27 : vector<16xf32> to vector<16x1xf32>
    %29 = vector.broadcast %28 : vector<16x1xf32> to vector<16x128xf32>
    %30 = arith.divf %26, %29 : vector<16x128xf32>
    %31 = vector.extract_strided_slice %30 {offsets = [0, 0], sizes = [16, 8], strides = [1, 1]} : vector<16x128xf32> to vector<16x8xf32>
    %c0_19 = arith.constant 0 : index
    %c0_20 = arith.constant 0 : index
    %32 = vector.load %arg8[%c0_19, %c0_20] : memref<16x8xf32, #tpu.memory_space<vmem>>, vector<16x8xf32>
    tpu.vector_store %arg8[%c0_19, %c0_20], %31 {strides = array<i32>} : memref<16x8xf32, #tpu.memory_space<vmem>>, vector<16x8xf32>,
    return
  }
  func.func @transform_0(%arg0: i32) -> (i32, i32) {
    %c0_i32 = arith.constant 0 : i32
    %c0_i32_0 = arith.constant 0 : i32
    return %arg0, %c0_i32 : i32, i32
  }
  func.func @transform_1(%arg0: i32) -> (i32, i32) {
    %c0_i32 = arith.constant 0 : i32
    %c0_i32_0 = arith.constant 0 : i32
    %c0_i32_1 = arith.constant 0 : i32
    return %c0_i32, %c0_i32_0 : i32, i32
  }
  func.func @transform_2(%arg0: i32) -> (i32, i32) {
    %c0_i32 = arith.constant 0 : i32
    %c0_i32_0 = arith.constant 0 : i32
    %c0_i32_1 = arith.constant 0 : i32
    return %c0_i32, %c0_i32_0 : i32, i32
  }
  func.func @transform_3(%arg0: i32) -> (i32, i32) {
    %c0_i32 = arith.constant 0 : i32
    %c0_i32_0 = arith.constant 0 : i32
    %c0_i32_1 = arith.constant 0 : i32
    return %c0_i32, %c0_i32_0 : i32, i32
  }
  func.func @transform_4(%arg0: i32) -> (i32, i32) {
    %c0_i32 = arith.constant 0 : i32
    %c0_i32_0 = arith.constant 0 : i32
    %c0_i32_1 = arith.constant 0 : i32
    return %c0_i32, %c0_i32_0 : i32, i32
  }
  func.func @transform_5(%arg0: i32) -> (i32, i32) {
    %c0_i32 = arith.constant 0 : i32
    %c0_i32_0 = arith.constant 0 : i32
    %c0_i32_1 = arith.constant 0 : i32
    return %c0_i32, %c0_i32_0 : i32, i32
  }
  func.func @transform_6(%arg0: i32) -> (i32, i32) {
    %c0_i32 = arith.constant 0 : i32
    %c0_i32_0 = arith.constant 0 : i32
    %c0_i32_1 = arith.constant 0 : i32
    return %c0_i32, %c0_i32_0 : i32, i32
  }
  func.func @transform_7(%arg0: i32) -> (i32, i32) {
    %c0_i32 = arith.constant 0 : i32
    %c0_i32_0 = arith.constant 0 : i32
    return %arg0, %c0_i32 : i32, i32
  }
}

</mosaic_0001>

<bundles_post_ra>
// kernel: tpu_custom_call.1
= control target key start
LH: loop header
LB: loop body
LE: loop exit
PB: predicated region body
PF: predicated region fallthrough
CT: control target
= control target key end

     0   :  { %12 = vsyncpa [#allocation3], 0  ;;  %s780_s0 = inlined_call_operand.hbm [shape: bf16[16,16], index: 0, kind: input, shape index: {}]   ;;  %s781_s1 = inlined_call_operand.hbm [shape: bf16[16,128], index: 1, kind: input, shape index: {}]   ;;  %s782_s2 = inlined_call_operand.vmem [shape: f32[1,128], index: 2, kind: input, shape index: {}]   ;;  %s783_s3 = inlined_call_operand.hbm [shape: bf16[128,128], index: 3, kind: input, shape index: {}]   ;;  %s784_s4 = inlined_call_operand.vmem [shape: f32[1,128], index: 4, kind: input, shape index: {}]   ;;  %s785_s5 = inlined_call_operand.hbm [shape: bf16[128,128], index: 5, kind: input, shape index: {}]   ;;  %s786_s6 = inlined_call_operand.vmem [shape: f32[1,128], index: 6, kind: input, shape index: {}]   ;;  %s787_s7 = inlined_call_operand.vmem [shape: f32[16,8], index: 7, kind: output, shape index: {}]  }
   0x1   :  { %13 = vsyncpa [#allocation5], 0 }
   0x2   :  { %14 = vsyncpa [#allocation8], 0  ;;  %s623_s24 = smov [#allocation4]   ;;  %s624_s26 = smov [#allocation2]  }
   0x3   :  { %s32_s25 = sshll.u32 %s623_s24, 4  ;;  %s20_s27 = sshll.u32 %s624_s26, 4  ;;  %s33_s25 = int_to_ptr.vmem [resolvable:$true] %s32_s25  ;;  %s671_s27 = int_to_ptr.vmem [resolvable:$true] %s20_s27 }
   0x4   :  { %s529_s30 = scalar_lea.hbm %s781_s1, 128 }
   0x5   :  { %p530_p0 = scmp.ne.s32.totalorder %s781_s1, %s529_s30  ;;  %p533_p1 = scmp.lt.u32.totalorder %s529_s30, %s781_s1 }
   0x7   :  { %p535_p2 = pnand %p533_p1, %p530_p0 }
   0x9   :  { %538 = shalt.err (!%p535_p2)
}
   0xa   :  { %s539_s12 = scalar_lea.vmem %s33_s25, 128  ;;  %p544_p4 = scmp.lt.s32.totalorder %s33_s25, %s33_s25 }
   0xb   :  { %p540_p3 = scmp.ne.s32.totalorder %s33_s25, %s539_s12  ;;  %p545_p5 = scmp.lt.s32.totalorder %s539_s12, %s539_s12 }
   0xd   :  { %p546_p6 = por %p545_p5, %p544_p4 }
   0xf   :  { %p547_p7 = pnand %p546_p6, %p540_p3 }
  0x11   :  { %550 = shalt.err (!%p547_p7)
}
  0x12   :  { %s625_s13 = smov 64   ;;  %s626_s14 = smov 4  }
  0x13   :  { %38 = dma.hbm_to_vmem [thread:$0]  %s781_s1, 128, %s33_s25, [#allocation5], %s625_s13, %s625_s13, %s626_s14  }
  0x14   :  { %s551_s19 = scalar_lea.hbm %s780_s0, 128 }
  0x15   :  { %p552_p8 = scmp.ne.s32.totalorder %s780_s0, %s551_s19  ;;  %p555_p9 = scmp.lt.u32.totalorder %s551_s19, %s780_s0 }
  0x17   :  { %p557_p10 = pnand %p555_p9, %p552_p8 }
  0x19   :  { %560 = shalt.err (!%p557_p10)
}
  0x1a   :  { %s561_s24 = scalar_lea.vmem %s671_s27, 128  ;;  %p566_p12 = scmp.lt.s32.totalorder %s671_s27, %s671_s27 }
  0x1b   :  { %p562_p11 = scmp.ne.s32.totalorder %s671_s27, %s561_s24  ;;  %p567_p13 = scmp.lt.s32.totalorder %s561_s24, %s561_s24 }
  0x1d   :  { %p568_p0 = por %p567_p13, %p566_p12 }
  0x1f   :  { %p569_p1 = pnand %p568_p0, %p562_p11 }
  0x21   :  { %572 = shalt.err (!%p569_p1)
}
  0x22   :  { %26 = dma.hbm_to_vmem [thread:$0]  %s780_s0, 128, %s671_s27, [#allocation3], %s625_s13, %s625_s13, %s626_s14  }
  0x23   :  { %s627_s26 = smov [#allocation6]   ;;  %s628_s29 = smov [#allocation7]  }
  0x24   :  { %s46_s28 = sshll.u32 %s627_s26, 4  ;;  %s60_s30 = sshll.u32 %s628_s29, 4  ;;  %s47_s28 = int_to_ptr.vmem [resolvable:$true] %s46_s28  ;;  %s708_s30 = int_to_ptr.vmem [resolvable:$true] %s60_s30 }
  0x25   :  { %s573_s10 = scalar_lea.hbm %s783_s3, 1024 }
  0x26   :  { %p574_p2 = scmp.ne.s32.totalorder %s783_s3, %s573_s10  ;;  %p577_p3 = scmp.lt.u32.totalorder %s573_s10, %s783_s3 }
  0x28   :  { %p579_p4 = pnand %p577_p3, %p574_p2 }
  0x2a   :  { %582 = shalt.err (!%p579_p4)
}
  0x2b   :  { %s583_s0 = scalar_lea.vmem %s47_s28, 1024  ;;  %p588_p6 = scmp.lt.s32.totalorder %s47_s28, %s47_s28 }
  0x2c   :  { %p584_p5 = scmp.ne.s32.totalorder %s47_s28, %s583_s0  ;;  %p589_p7 = scmp.lt.s32.totalorder %s583_s0, %s583_s0 }
  0x2e   :  { %p590_p8 = por %p589_p7, %p588_p6 }
  0x30   :  { %p591_p9 = pnand %p590_p8, %p584_p5 }
  0x32   :  { %594 = shalt.err (!%p591_p9)
}
  0x33   :  { %52 = dma.hbm_to_vmem [thread:$0]  %s783_s3, 1024, %s47_s28, [#allocation5], %s625_s13, %s625_s13, %s626_s14  }
  0x34   :  { %s595_s20 = scalar_lea.hbm %s785_s5, 1024 }
  0x35   :  { %p596_p10 = scmp.ne.s32.totalorder %s785_s5, %s595_s20  ;;  %p599_p11 = scmp.lt.u32.totalorder %s595_s20, %s785_s5 }
  0x37   :  { %p601_p12 = pnand %p599_p11, %p596_p10 }
  0x39   :  { %604 = shalt.err (!%p601_p12)
}
  0x3a   :  { %s605_s1 = scalar_lea.vmem %s708_s30, 1024  ;;  %p610_p0 = scmp.lt.s32.totalorder %s708_s30, %s708_s30 }
  0x3b   :  { %p606_p13 = scmp.ne.s32.totalorder %s708_s30, %s605_s1  ;;  %p611_p1 = scmp.lt.s32.totalorder %s605_s1, %s605_s1 }
  0x3d   :  { %p612_p2 = por %p611_p1, %p610_p0 }
  0x3f   :  { %p613_p3 = pnand %p612_p2, %p606_p13 }
  0x41   :  { %616 = shalt.err (!%p613_p3)
}
  0x42   :  { %66 = dma.hbm_to_vmem [thread:$0]  %s785_s5, 1024, %s708_s30, [#allocation8], %s625_s13, %s625_s13, %s626_s14  }
  0x43   :  { %617 = dma.done.wait [#allocation3], 128  }
  0x44   :  { %618 = vsyncadd [#allocation3], 4294967168 }
  0x45   :  { %619 = dma.done.wait [#allocation5], 1152  }
  0x46   :  { %620 = vsyncadd [#allocation5], 4294966144 }
  0x47   :  { %621 = dma.done.wait [#allocation8], 1024  }
  0x48   :  { %622 = vsyncadd [#allocation8], 4294966272  ;;  %v629_v0 = vmov 0.0   ;;  %vm630_vm0 = vmmov 0   ;;  %v503_v1 = vld [vmem:[#allocation4] sm:$0xff]   ;;  %v504_v2 = vld [vmem:[#allocation2] sm:$0xff]  }
  0x49   :  { %449 = vmatprep.subr.bf16.mxu0 %v629_v0  ;;  %451 = vmatprep.mubr.msk.bf16.mxu0 %vm630_vm0, %v629_v0  ;;  %vm104_vm1 = vcmask 130048   ;;  %v505_v3 = vld [vmem:[#allocation6] sm:$0xff]   ;;  %v506_v4 = vld [vmem:[#allocation6 + $0x8] sm:$0xff]   ;;  %v507_v5 = vld [vmem:[#allocation6 + $0x10] sm:$0xff]   ;;  %vm397_vm2 = vcmask 64512  }
  0x4a   :  { %455 = vmatprep.subr.bf16.mxu1 %v629_v0  ;;  %471 = vmatprep.mubr.msk.bf16.mxu1 %vm630_vm0, %v629_v0  ;;  %v508_v6 = vld [vmem:[#allocation6 + $0x18] sm:$0xff]   ;;  %v509_v7 = vld [vmem:[#allocation6 + $0x20] sm:$0xff]   ;;  %v510_v8 = vld [vmem:[#allocation6 + $0x28] sm:$0xff]  }
  0x4b   :  { %450 = vmatpush3.bf16.msra.mxu0 %v503_v1  ;;  %456 = vmatpush3.bf16.msra.mxu1 %v505_v3  ;;  %v511_v9 = vld [vmem:[#allocation6 + $0x30] sm:$0xff]   ;;  %v512_v10 = vld [vmem:[#allocation6 + $0x38] sm:$0xff]   ;;  %v513_v11 = vld [vmem:[#allocation7] sm:$0xff]  }
  0x4c   :  { %475 = vmatprep.subr.bf16.mxu0 %v629_v0  ;;  %457 = vmatprep.subr.bf16.mxu1 %v629_v0  ;;  %v514_v12 = vld [vmem:[#allocation7 + $0x8] sm:$0xff]   ;;  %v515_v13 = vld [vmem:[#allocation7 + $0x10] sm:$0xff]   ;;  %v516_v14 = vld [vmem:[#allocation7 + $0x18] sm:$0xff]  }
  0x4d   :  { %v517_v15 = vld [vmem:[#allocation7 + $0x20] sm:$0xff]   ;;  %v518_v16 = vld [vmem:[#allocation7 + $0x28] sm:$0xff]   ;;  %v407_v17 = vld [vmem:[%s782_s2] ss:$0 sm:$0xff] }
  0x4e   :  { %452 = vmatmul.mubr.msk.bf16.vlgmr.msra.gmra.mrb[0].mxu0 %vm104_vm1, %v504_v2  ;;  %v519_v27 = vld [vmem:[#allocation7 + $0x30] sm:$0xff]   ;;  %v520_v28 = vld [vmem:[#allocation7 + $0x38] sm:$0xff]  }
  0x4f   :  { %491 = vmatprep.mubr.msk.bf16.mxu0 %vm630_vm0, %v629_v0  ;;  %458 = vmatpush3.bf16.msra.mxu1 %v506_v4  ;;  %v411_v29 = vld [vmem:[%s784_s4] ss:$0 sm:$0xff] }
  0x50   :  { %459 = vmatprep.subr.bf16.mxu1 %v629_v0  ;;  %476 = vmatpush3.bf16.msra.mxu0 %v513_v11  ;;  %v420_v39 = vld [vmem:[%s786_s6] ss:$0 sm:$0xff] }
  0x51   :  { %477 = vmatprep.subr.bf16.mxu0 %v629_v0 }
  0x53   :  { %460 = vmatpush3.bf16.msra.mxu1 %v507_v5 }
  0x54   :  { %461 = vmatprep.subr.bf16.mxu1 %v629_v0  ;;  %478 = vmatpush3.bf16.msra.mxu0 %v514_v12 }
  0x55   :  { %479 = vmatprep.subr.bf16.mxu0 %v629_v0 }
  0x57   :  { %462 = vmatpush3.bf16.msra.mxu1 %v508_v6 }
  0x58   :  { %463 = vmatprep.subr.bf16.mxu1 %v629_v0  ;;  %480 = vmatpush3.bf16.msra.mxu0 %v515_v13 }
  0x59   :  { %481 = vmatprep.subr.bf16.mxu0 %v629_v0 }
  0x5b   :  { %464 = vmatpush3.bf16.msra.mxu1 %v509_v7 }
  0x5c   :  { %465 = vmatprep.subr.bf16.mxu1 %v629_v0  ;;  %482 = vmatpush3.bf16.msra.mxu0 %v516_v14 }
  0x5d   :  { %483 = vmatprep.subr.bf16.mxu0 %v629_v0 }
  0x5f   :  { %466 = vmatpush3.bf16.msra.mxu1 %v510_v8 }
  0x60   :  { %467 = vmatprep.subr.bf16.mxu1 %v629_v0  ;;  %484 = vmatpush3.bf16.msra.mxu0 %v517_v15 }
  0x61   :  { %485 = vmatprep.subr.bf16.mxu0 %v629_v0 }
  0x63   :  { %468 = vmatpush3.bf16.msra.mxu1 %v511_v9 }
  0x64   :  { %469 = vmatprep.subr.bf16.mxu1 %v629_v0  ;;  %486 = vmatpush3.bf16.msra.mxu0 %v518_v16 }
  0x65   :  { %487 = vmatprep.subr.bf16.mxu0 %v629_v0 }
  0x67   :  { %470 = vmatpush3.bf16.msra.mxu1 %v512_v10 }
  0x68   :  { %488 = vmatpush3.bf16.msra.mxu0 %v519_v27 }
  0x69   :  { %489 = vmatprep.subr.bf16.mxu0 %v629_v0 }
  0x6c   :  { %490 = vmatpush3.bf16.msra.mxu0 %v520_v28 }
 0x121   :  { %v142_v18 = vpop.f32.mrb[0].mxu0 }
 0x122   :  { %v143_v19 = vadd.f32 %v407_v17, %v142_v18  ;;  %v453_v20 = vpop.f32.mrb[1].mxu0 }
 0x123   :  { %v145_v21 = vpop.f32.mrb[2].mxu0 }
 0x124   :  { %v146_v22 = vadd.f32 %v407_v17, %v145_v21  ;;  %v454_v23 = vpop.f32.mrb[3].mxu0  ;;  %v149_v24 = vmax.f32 %v143_v19, 0.0 }
 0x126   :  { %v150_v25 = vmax.f32 %v146_v22, 0.0 }
 0x128   :  { %v151_v26 = vpack.c.bf16 %v150_v25, %v149_v24 }
 0x12a   :  { %472 = vmatmul.mubr.bf16.vlgmr.msra.gmra.mrb[0].mxu1 %v151_v26 }
 0x1fd   :  { %v257_v30 = vpop.f32.mrb[0].mxu1 }
 0x1fe   :  { %v258_v31 = vadd.f32 %v411_v29, %v257_v30  ;;  %v473_v32 = vpop.f32.mrb[1].mxu1 }
 0x1ff   :  { %v260_v33 = vpop.f32.mrb[2].mxu1 }
 0x200   :  { %v261_v34 = vadd.f32 %v411_v29, %v260_v33  ;;  %v474_v35 = vpop.f32.mrb[3].mxu1  ;;  %v264_v36 = vmax.f32 %v258_v31, 0.0 }
 0x202   :  { %v265_v37 = vmax.f32 %v261_v34, 0.0 }
 0x204   :  { %v266_v38 = vpack.c.bf16 %v265_v37, %v264_v36 }
 0x206   :  { %492 = vmatmul.mubr.bf16.vlgmr.msra.gmra.mrb[4].mxu0 %v266_v38 }
 0x2d9   :  { %v372_v40 = vpop.f32.mrb[4].mxu0 }
 0x2da   :  { %v373_v41 = vadd.f32 %v420_v39, %v372_v40  ;;  %v493_v42 = vpop.f32.mrb[5].mxu0 }
 0x2db   :  { %v375_v43 = vpop.f32.mrb[6].mxu0 }
 0x2dc   :  { %379 = vmax.xlane.f32.xlu0 %v373_v41  ;;  %v494_v44 = vpop.f32.mrb[7].mxu0  ;;  %v376_v45 = vadd.f32 %v420_v39, %v375_v43 }
 0x2e0   :  { %381 = vmax.xlane.f32.xlu0 %v376_v45 }
 0x369   :  { %v380_v46 = vpop.xlane.xlu0 %379 }
 0x36a   :  { %v383_v47 = vsub.f32 %v373_v41, %v380_v46 }
 0x36c   :  { %v385_v48 = vmul.f32 1.442695, %v383_v47 }
 0x36d   :  { %v382_v49 = vpop.xlane.xlu0 %381 }
 0x36e   :  { %521 = vpow2.f32 %v385_v48  ;;  %v384_v50 = vsub.f32 %v376_v45, %v382_v49 }
 0x370   :  { %v387_v51 = vmul.f32 1.442695, %v384_v50 }
 0x372   :  { %523 = vpow2.f32 %v387_v51 }
 0x378   :  { %v522_v52 = vpop.eup %521 }
 0x379   :  { %389 = vadd.xlane.f32.xlu1 %v522_v52 }
 0x37c   :  { %v524_v53 = vpop.eup %523 }
 0x37d   :  { %391 = vadd.xlane.f32.xlu1 %v524_v53 }
 0x406   :  { %v390_v54 = vpop.xlane.xlu1 %389 }
 0x407   :  { %525 = vrcp.f32 %v390_v54 }
 0x40a   :  { %v392_v55 = vpop.xlane.xlu1 %391 }
 0x40b   :  { %527 = vrcp.f32 %v392_v55 }
 0x411   :  { %v526_v56 = vpop.eup %525 }
 0x412   :  { %v394_v57 = vmul.f32 %v526_v56, %v522_v52 }
 0x414   :  { %398 = vst.msk [vmem:[%s787_s7] sm:$0xff] %vm397_vm2, %v394_v57 }
 0x415   :  { %v528_v58 = vpop.eup %527 }
 0x416   :  { %v396_v59 = vmul.f32 %v528_v58, %v524_v53 }
 0x418   :  { %399 = vst.msk [vmem:[%s787_s7 + $0x8] sm:$0xff] %vm397_vm2, %v396_v59 }
 0x419   :  { %404 = vsyncpa [#allocation3], 1 }
 0x41a   :  { %405 = vsyncpa [#allocation5], 1 }
 0x41b   :  { %406 = vsyncpa [#allocation8], 1 }

</bundles_post_ra>
